<compile_context>
chip_gen: v7x
topology: tpu7x:2x2x1
jax: 0.10.0
libtpu: 0.0.40
codegen_flags: <defaults>
</compile_context>

<pallas_src>
import functools

import jax
import jax.numpy as jnp
from jax.experimental import pallas as pl
from jax.experimental.pallas import tpu as pltpu


def _round_up(x, m):
    return -(-x // m) * m


# ----------------------------------------------------------------------------
# Fused GEMM kernels.
# grid = (M tiles [parallel], K tiles [arbitrary, innermost]).
# The f32 output block is resident across K and acts as the accumulator.
# Epilogue (bias + optional ReLU [+ residual]) runs in f32 on the last K step.
# ----------------------------------------------------------------------------
def _gemm_kernel(x_ref, w_ref, b_ref, o_ref, *, relu_out):
    k = pl.program_id(1)

    @pl.when(k == 0)
    def _():
        o_ref[...] = jnp.zeros_like(o_ref)

    o_ref[...] += jnp.dot(
        x_ref[...], w_ref[...], preferred_element_type=jnp.float32
    )

    @pl.when(k == pl.num_programs(1) - 1)
    def _():
        y = o_ref[...] + b_ref[...]
        if relu_out:
            y = jnp.maximum(y, 0.0)
        o_ref[...] = y


def _gemm_res_kernel(x_ref, w_ref, b_ref, r_ref, o_ref, *, relu_out):
    k = pl.program_id(1)

    @pl.when(k == 0)
    def _():
        o_ref[...] = jnp.zeros_like(o_ref)

    o_ref[...] += jnp.dot(
        x_ref[...], w_ref[...], preferred_element_type=jnp.float32
    )

    @pl.when(k == pl.num_programs(1) - 1)
    def _():
        y = o_ref[...] + b_ref[...]
        if relu_out:
            y = jnp.maximum(y, 0.0)
        o_ref[...] = y + r_ref[...]


def _gemm_fused(patches, w_mat, bias2d, residual, relu_out):
    """patches: (M, K) bf16, w_mat: (K, Np) bf16 (Np % 128 == 0),
    bias2d: (1, Np) f32, residual: (M, Np) f32 or None.  Returns (Mp, Np) f32."""
    M, K = patches.shape
    Np = w_mat.shape[1]

    # --- K tiling: exact single tile for small K (no zero-padding waste),
    #     512-wide tiles with an inner "arbitrary" reduction axis otherwise.
    if K <= 2048:
        Kp = _round_up(K, 16)  # bf16 sublane friendliness for the weight tile
        tk = Kp
    else:
        tk = 512
        Kp = _round_up(K, tk)

    # --- M tiling: bounded VMEM footprint independent of problem size.
    tm = min(512, _round_up(M, 16))
    Mp = _round_up(M, tm)

    p = patches
    if (Mp, Kp) != (M, K):
        p = jnp.pad(p, ((0, Mp - M), (0, Kp - K)))
    wm = w_mat
    if Kp != K:
        wm = jnp.pad(wm, ((0, Kp - K), (0, 0)))

    in_specs = [
        pl.BlockSpec((tm, tk), lambda m, k: (m, k)),   # patches tile
        pl.BlockSpec((tk, Np), lambda m, k: (k, 0)),   # weight tile
        pl.BlockSpec((1, Np), lambda m, k: (0, 0)),    # bias (full)
    ]
    args = [p, wm, bias2d]

    if residual is None:
        kernel = functools.partial(_gemm_kernel, relu_out=relu_out)
    else:
        r = residual.astype(jnp.float32)
        if Mp != M:
            r = jnp.pad(r, ((0, Mp - M), (0, 0)))
        in_specs.append(pl.BlockSpec((tm, Np), lambda m, k: (m, 0)))
        args.append(r)
        kernel = functools.partial(_gemm_res_kernel, relu_out=relu_out)

    out = pl.pallas_call(
        kernel,
        out_shape=jax.ShapeDtypeStruct((Mp, Np), jnp.float32),
        grid_spec=pltpu.PrefetchScalarGridSpec(
            num_scalar_prefetch=0,
            grid=(Mp // tm, Kp // tk),
            in_specs=in_specs,
            out_specs=pl.BlockSpec((tm, Np), lambda m, k: (m, 0)),
        ),
        compiler_params=pltpu.CompilerParams(
            dimension_semantics=("parallel", "arbitrary"),
            vmem_limit_bytes=32 * 1024 * 1024,
        ),
    )(*args)
    return out


# ----------------------------------------------------------------------------
# Conv3d = (optional fused input ReLU) + im2col (bf16, XLA glue) + fused GEMM.
# Output channels are returned lane-padded to a multiple of 128; padded lanes
# are always exactly zero.
# ----------------------------------------------------------------------------
def conv3d(x, w, b=None, *, stride=1, padding=0, relu_in=False, relu_out=False,
           residual=None):
    """x: (N, D, H, W, Cp) channels-last (Cp >= true cin, extra lanes are zero).
    w: PyTorch layout (Cout, Cin, kd, kh, kw)."""
    cout, cin, kd, kh, kw = w.shape
    n, D, H, W, Cp = x.shape
    assert Cp >= cin

    xs = x[..., :cin]                      # drop padded lanes before im2col
    if relu_in:
        xs = jnp.maximum(xs, 0.0)          # fused into the patch-build pass
    xs = xs.astype(jnp.bfloat16)           # bf16 MXU operands, f32 accumulate

    Do = (D + 2 * padding - kd) // stride + 1
    Ho = (H + 2 * padding - kh) // stride + 1
    Wo = (W + 2 * padding - kw) // stride + 1
    M = n * Do * Ho * Wo

    if kd == 1 and kh == 1 and kw == 1 and stride == 1 and padding == 0:
        # 1x1x1 conv: no im2col, true K = Cin (no K padding waste).
        patches = xs.reshape(M, cin)
        K = cin
    else:
        xp = jnp.pad(
            xs,
            ((0, 0), (padding, padding), (padding, padding),
             (padding, padding), (0, 0)),
        )
        taps = []
        for i in range(kd):
            for j in range(kh):
                for kk in range(kw):
                    taps.append(
                        xp[:,
                           i: i + stride * Do: stride,
                           j: j + stride * Ho: stride,
                           kk: kk + stride * Wo: stride,
                           :]
                    )
        # K ordered (kd, kh, kw, Cin) to match the weight reshape below.
        patches = jnp.stack(taps, axis=-2).reshape(M, kd * kh * kw * cin)
        K = kd * kh * kw * cin

    # Lane-dense output channels.
    Np = _round_up(cout, 128)
    w_mat = jnp.transpose(w, (2, 3, 4, 1, 0)).reshape(K, cout)
    w_mat = jnp.pad(w_mat, ((0, 0), (0, Np - cout))).astype(jnp.bfloat16)
    bias = b if b is not None else jnp.zeros((cout,), jnp.float32)
    bias2d = jnp.pad(bias.astype(jnp.float32), (0, Np - cout)).reshape(1, Np)

    res = None
    if residual is not None:
        res = residual.reshape(-1, residual.shape[-1])
        assert res.shape == (M, Np)

    out = _gemm_fused(patches, w_mat, bias2d, res, relu_out)  # (Mp, Np) f32
    return out[:M].reshape(n, Do, Ho, Wo, Np)


# ----------------------------------------------------------------------------
# Encoder forward (matches PyTorch semantics)
# ----------------------------------------------------------------------------
def residual_block(x, w1, w2):
    # block(x) = Conv1x1(ReLU(Conv3x3(ReLU(x))));  return x + block(x)
    h = conv3d(x, w1, None, stride=1, padding=1, relu_in=True, relu_out=True)
    h = conv3d(h, w2, None, stride=1, padding=0, relu_out=False, residual=x)
    return h


def encoder_forward(x_ndhwc, params):
    num_hiddens = params["w3"].shape[0]
    x = conv3d(x_ndhwc, params["w1"], params["b1"], stride=2, padding=1, relu_out=True)
    x = conv3d(x, params["w2"], params["b2"], stride=2, padding=1, relu_out=True)
    x = conv3d(x, params["w3"], params["b3"], stride=1, padding=1, relu_out=False)
    for rw1, rw2 in params["res"]:
        x = residual_block(x, rw1, rw2)
    return x[..., :num_hiddens]   # drop lane padding once, at the very end


# ----------------------------------------------------------------------------
# Deterministic parameter init (PyTorch-style fan-in uniform bounds)
# ----------------------------------------------------------------------------
def _conv_init(key, cout, cin, k, bias=True):
    fan_in = cin * k * k * k
    bound = 1.0 / jnp.sqrt(fan_in)
    kw_, kb_ = jax.random.split(key)
    w = jax.random.uniform(kw_, (cout, cin, k, k, k), jnp.float32, -bound, bound)
    b = (
        jax.random.uniform(kb_, (cout,), jnp.float32, -bound, bound)
        if bias
        else None
    )
    return w, b


def init_params(key, in_channels, num_hiddens, num_residual_layers, num_residual_hiddens):
    keys = jax.random.split(key, 3 + 2 * num_residual_layers)
    w1, b1 = _conv_init(keys[0], num_hiddens // 2, in_channels, 4, bias=True)
    w2, b2 = _conv_init(keys[1], num_hiddens, num_hiddens // 2, 4, bias=True)
    w3, b3 = _conv_init(keys[2], num_hiddens, num_hiddens, 3, bias=True)
    res = []
    for i in range(num_residual_layers):
        rw1, _ = _conv_init(keys[3 + 2 * i], num_residual_hiddens, num_hiddens, 3, bias=False)
        rw2, _ = _conv_init(keys[4 + 2 * i], num_hiddens, num_residual_hiddens, 1, bias=False)
        res.append((rw1, rw2))
    return {"w1": w1, "b1": b1, "w2": w2, "b2": b2, "w3": w3, "b3": b3, "res": res}


if __name__ == "__main__":
    # Small, forward-consistent shapes.
    batch, in_channels = 1, 3
    num_hiddens, num_residual_layers, num_residual_hiddens = 32, 2, 16
    D = H = W = 8

    key = jax.random.PRNGKey(0)
    k_x, k_p = jax.random.split(key)

    # PyTorch-convention input (N, C, D, H, W), transposed once to channels-last.
    x_ncdhw = jax.random.normal(k_x, (batch, in_channels, D, H, W), jnp.float32)
    x = jnp.transpose(x_ncdhw, (0, 2, 3, 4, 1))  # (N, D, H, W, C)

    params = init_params(
        k_p, in_channels, num_hiddens, num_residual_layers, num_residual_hiddens
    )

    out = encoder_forward(x, params)
    out = jax.block_until_ready(out)
    # Expected output (channels-last): (1, D/4, H/4, W/4, num_hiddens)
    assert out.shape == (batch, D // 4, H // 4, W // 4, num_hiddens), out.shape
    assert bool(jnp.all(jnp.isfinite(out)))
    print("KERNEL_OK")
</pallas_src>

<mosaic_0001>
module attributes {stable_mosaic.version = 11 : i64} {
  func.func @_gemm_kernel(%arg0: i32, %arg1: i32, %arg2: memref<64x192xbf16, #tpu.memory_space<vmem>>, %arg3: memref<192x128xbf16, #tpu.memory_space<vmem>>, %arg4: memref<1x128xf32, #tpu.memory_space<vmem>>, %arg5: memref<64x128xf32, #tpu.memory_space<vmem>>) attributes {dimension_semantics = [#tpu.dimension_semantics<parallel>, #tpu.dimension_semantics<arbitrary>], iteration_bounds = array<i64: 1, 1>, scalar_prefetch = 0 : i64, scratch_operands = 0 : i64, tpu.core_type = #tpu.core_type<tc>, window_params = [{transform_indices = @transform_0, window_bounds = array<i64: 64, 192>}, {transform_indices = @transform_1, window_bounds = array<i64: 192, 128>}, {pipeline_mode = #tpu.pipeline_mode<synchronous>, transform_indices = @transform_2, window_bounds = array<i64: 1, 128>}, {transform_indices = @transform_3, window_bounds = array<i64: 64, 128>}]} {
    %c0_i32 = arith.constant 0 : i32
    %0 = arith.cmpi eq, %arg1, %c0_i32 : i32
    %1 = arith.extui %0 : i1 to i32
    %c0_i32_0 = arith.constant 0 : i32
    %2 = arith.cmpi ne, %1, %c0_i32_0 : i32
    scf.if %2 {
      %cst_10 = arith.constant 0.000000e+00 : f32
      %12 = vector.broadcast %cst_10 : f32 to vector<64x128xf32>
      %c0_11 = arith.constant 0 : index
      %c0_12 = arith.constant 0 : index
      %13 = vector.load %arg5[%c0_11, %c0_12] : memref<64x128xf32, #tpu.memory_space<vmem>>, vector<64x128xf32>
      tpu.vector_store %arg5[%c0_11, %c0_12], %12 {strides = array<i32>} : memref<64x128xf32, #tpu.memory_space<vmem>>, vector<64x128xf32>,
    } else {
    }
    %c0 = arith.constant 0 : index
    %c0_1 = arith.constant 0 : index
    %3 = vector.load %arg5[%c0, %c0_1] : memref<64x128xf32, #tpu.memory_space<vmem>>, vector<64x128xf32>
    %c0_2 = arith.constant 0 : index
    %c0_3 = arith.constant 0 : index
    %4 = vector.load %arg2[%c0_2, %c0_3] : memref<64x192xbf16, #tpu.memory_space<vmem>>, vector<64x192xbf16>
    %c0_4 = arith.constant 0 : index
    %c0_5 = arith.constant 0 : index
    %5 = vector.load %arg3[%c0_4, %c0_5] : memref<192x128xbf16, #tpu.memory_space<vmem>>, vector<192x128xbf16>
    %cst = arith.constant dense<0.000000e+00> : vector<64x128xf32>
    %6 = tpu.matmul %4, %5, %cst {dimension_numbers = #tpu.dot_dimension_numbers<[1], [0], [0], [1], [0, 0, 1, 1], [], []>} : vector<64x192xbf16>, vector<192x128xbf16>, vector<64x128xf32> -> vector<64x128xf32>
    %7 = arith.addf %3, %6 : vector<64x128xf32>
    %c0_6 = arith.constant 0 : index
    %c0_7 = arith.constant 0 : index
    %8 = vector.load %arg5[%c0_6, %c0_7] : memref<64x128xf32, #tpu.memory_space<vmem>>, vector<64x128xf32>
    tpu.vector_store %arg5[%c0_6, %c0_7], %7 {strides = array<i32>} : memref<64x128xf32, #tpu.memory_space<vmem>>, vector<64x128xf32>,
    %c0_i32_8 = arith.constant 0 : i32
    %9 = arith.cmpi eq, %arg1, %c0_i32_8 : i32
    %10 = arith.extui %9 : i1 to i32
    %c0_i32_9 = arith.constant 0 : i32
    %11 = arith.cmpi ne, %10, %c0_i32_9 : i32
    scf.if %11 {
      %c0_10 = arith.constant 0 : index
      %c0_11 = arith.constant 0 : index
      %12 = vector.load %arg5[%c0_10, %c0_11] : memref<64x128xf32, #tpu.memory_space<vmem>>, vector<64x128xf32>
      %c0_12 = arith.constant 0 : index
      %c0_13 = arith.constant 0 : index
      %13 = vector.load %arg4[%c0_12, %c0_13] : memref<1x128xf32, #tpu.memory_space<vmem>>, vector<1x128xf32>
      %14 = vector.broadcast %13 : vector<1x128xf32> to vector<64x128xf32>
      %15 = arith.addf %12, %14 : vector<64x128xf32>
      %cst_14 = arith.constant 0.000000e+00 : f32
      %16 = vector.broadcast %cst_14 : f32 to vector<64x128xf32>
      %17 = arith.maximumf %15, %16 : vector<64x128xf32>
      %c0_15 = arith.constant 0 : index
      %c0_16 = arith.constant 0 : index
      %18 = vector.load %arg5[%c0_15, %c0_16] : memref<64x128xf32, #tpu.memory_space<vmem>>, vector<64x128xf32>
      tpu.vector_store %arg5[%c0_15, %c0_16], %17 {strides = array<i32>} : memref<64x128xf32, #tpu.memory_space<vmem>>, vector<64x128xf32>,
    } else {
    }
    return
  }
  func.func @transform_0(%arg0: i32, %arg1: i32) -> (i32, i32) {
    %c0_i32 = arith.constant 0 : i32
    return %arg0, %arg1 : i32, i32
  }
  func.func @transform_1(%arg0: i32, %arg1: i32) -> (i32, i32) {
    %c0_i32 = arith.constant 0 : i32
    %c0_i32_0 = arith.constant 0 : i32
    return %arg1, %c0_i32 : i32, i32
  }
  func.func @transform_2(%arg0: i32, %arg1: i32) -> (i32, i32) {
    %c0_i32 = arith.constant 0 : i32
    %c0_i32_0 = arith.constant 0 : i32
    %c0_i32_1 = arith.constant 0 : i32
    return %c0_i32, %c0_i32_0 : i32, i32
  }
  func.func @transform_3(%arg0: i32, %arg1: i32) -> (i32, i32) {
    %c0_i32 = arith.constant 0 : i32
    %c0_i32_0 = arith.constant 0 : i32
    return %arg0, %c0_i32 : i32, i32
  }
}

</mosaic_0001>

<bundles_post_ra>
// kernel: tpu_custom_call.1
= control target key start
LH: loop header
LB: loop body
LE: loop exit
PB: predicated region body
PF: predicated region fallthrough
CT: control target
= control target key end

     0   :  { %8 = vsyncpa [#allocation3], 0  ;;  %s589_s0 = inlined_call_operand.hbm [shape: bf16[64,192], index: 0, kind: input, shape index: {}]   ;;  %s590_s1 = inlined_call_operand.hbm [shape: bf16[192,128], index: 1, kind: input, shape index: {}]   ;;  %s591_s2 = inlined_call_operand.vmem [shape: f32[1,128], index: 2, kind: input, shape index: {}]   ;;  %s592_s3 = inlined_call_operand.hbm [shape: f32[64,128], index: 3, kind: output, shape index: {}]  }
   0x1   :  { %9 = vsyncpa [#allocation6], 0 }
   0x2   :  { %10 = vsyncpa [#allocation4], 0  ;;  %s512_s12 = smov [#allocation2]   ;;  %s440_s16 = scalar_lea.hbm %s589_s0, 1024 }
   0x3   :  { %s16_s13 = sshll.u32 %s512_s12, 4  ;;  %p441_p0 = scmp.ne.s32.totalorder %s589_s0, %s440_s16  ;;  %s17_s13 = int_to_ptr.vmem [resolvable:$true] %s16_s13 }
   0x4   :  { %p444_p1 = scmp.lt.u32.totalorder %s440_s16, %s589_s0 }
   0x6   :  { %p446_p2 = pnand %p444_p1, %p441_p0 }
   0x8   :  { %449 = shalt.err (!%p446_p2)
}
   0x9   :  { %s450_s21 = scalar_lea.vmem %s17_s13, 1024  ;;  %p455_p4 = scmp.lt.s32.totalorder %s17_s13, %s17_s13 }
   0xa   :  { %p451_p3 = scmp.ne.s32.totalorder %s17_s13, %s450_s21  ;;  %p456_p5 = scmp.lt.s32.totalorder %s450_s21, %s450_s21 }
   0xc   :  { %p457_p6 = por %p456_p5, %p455_p4 }
   0xe   :  { %p458_p7 = pnand %p457_p6, %p451_p3 }
  0x10   :  { %461 = shalt.err (!%p458_p7)
}
  0x11   :  { %s513_s22 = smov 128   ;;  %s514_s23 = smov 8  }
  0x12   :  { %22 = dma.hbm_to_vmem [thread:$0]  %s589_s0, 1024, %s17_s13, [#allocation3], %s513_s22, %s513_s22, %s514_s23  }
  0x13   :  { %s515_s26 = smov [#allocation5]   ;;  %s462_s30 = scalar_lea.hbm %s590_s1, 1536 }
  0x14   :  { %s28_s27 = sshll.u32 %s515_s26, 4  ;;  %p463_p8 = scmp.ne.s32.totalorder %s590_s1, %s462_s30  ;;  %s29_s27 = int_to_ptr.vmem [resolvable:$true] %s28_s27 }
  0x15   :  { %p466_p9 = scmp.lt.u32.totalorder %s462_s30, %s590_s1 }
  0x17   :  { %p468_p10 = pnand %p466_p9, %p463_p8 }
  0x19   :  { %471 = shalt.err (!%p468_p10)
}
  0x1a   :  { %s472_s8 = scalar_lea.vmem %s29_s27, 1536  ;;  %p477_p12 = scmp.lt.s32.totalorder %s29_s27, %s29_s27 }
  0x1b   :  { %p473_p11 = scmp.ne.s32.totalorder %s29_s27, %s472_s8  ;;  %p478_p13 = scmp.lt.s32.totalorder %s472_s8, %s472_s8 }
  0x1d   :  { %p479_p0 = por %p478_p13, %p477_p12 }
  0x1f   :  { %p480_p1 = pnand %p479_p0, %p473_p11 }
  0x21   :  { %483 = shalt.err (!%p480_p1)
}
  0x22   :  { %s516_s0 = smov 64   ;;  %s517_s9 = smov 4  }
  0x23   :  { %34 = dma.hbm_to_vmem [thread:$0]  %s590_s1, 1536, %s29_s27, [#allocation6], %s516_s0, %s516_s0, %s517_s9  }
  0x24   :  { %506 = dma.done.wait [#allocation3], 1024  }
  0x25   :  { %507 = vsyncadd [#allocation3], 4294966272 }
  0x26   :  { %508 = dma.done.wait [#allocation6], 1536  }
  0x27   :  { %509 = vsyncadd [#allocation6], 4294965760  ;;  %v518_v0 = vmov 0   ;;  %v416_v1 = vld [vmem:[#allocation5] sm:$0xff]   ;;  %v417_v2 = vld [vmem:[#allocation5 + $0x8] sm:$0xff]   ;;  %vm204_vm0 = vcmask 523264  }
  0x28   :  { %217 = vmatprep.subr.bf16.mxu0 %v518_v0  ;;  %383 = vmatprep.subr.bf16.mxu1 %v518_v0  ;;  %v418_v3 = vld [vmem:[#allocation5 + $0x10] sm:$0xff]   ;;  %v419_v4 = vld [vmem:[#allocation5 + $0x18] sm:$0xff]   ;;  %v430_v5 = vld [vmem:[#allocation2 + $0x4] ss:$8 sps:$4 sm:$0xff]  }
  0x29   :  { %218 = vmatpush1.bf16.msra.mxu0 %v416_v1  ;;  %395 = vmatpush1.bf16.msra.mxu1 %v416_v1  ;;  %v420_v6 = vld [vmem:[#allocation5 + $0x20] sm:$0xff]   ;;  %v421_v8 = vld [vmem:[#allocation5 + $0x28] sm:$0xff]   ;;  %v422_v9 = vld [vmem:[#allocation5 + $0x30] sm:$0xff]  }
  0x2a   :  { %219 = vmatprep.subr.bf16.mxu0 %v518_v0  ;;  %384 = vmatprep.subr.bf16.mxu1 %v518_v0  ;;  %v433_v7 = vld [vmem:[#allocation2 + $0x24] ss:$8 sps:$4 sm:$0xff]   ;;  %v423_v10 = vld [vmem:[#allocation5 + $0x38] sm:$0xff]   ;;  %v426_v13 = vld [vmem:[#allocation5 + $0x50] sm:$0xff]  }
  0x2b   :  { %378 = vmatprep.mubr.msk.bf16.mxu0 %vm204_vm0, %v430_v5  ;;  %380 = vmatprep.mubr.msk.bf16.mxu1 %vm204_vm0, %v433_v7  ;;  %v424_v11 = vld [vmem:[#allocation5 + $0x40] sm:$0xff]   ;;  %v425_v12 = vld [vmem:[#allocation5 + $0x48] sm:$0xff]   ;;  %v427_v14 = vld [vmem:[#allocation5 + $0x58] sm:$0xff]  }
  0x2c   :  { %v428_v15 = vld [vmem:[#allocation2] ss:$8 sps:$4 sm:$0xff]   ;;  %v434_v17 = vld [vmem:[#allocation2 + $0x14] ss:$8 sps:$4 sm:$0xff]   ;;  %v438_v19 = vld [vmem:[#allocation2 + $0x10] ss:$8 sps:$4 sm:$0xff]  }
  0x2d   :  { %220 = vmatpush1.bf16.msra.mxu0 %v417_v2  ;;  %396 = vmatpush1.bf16.msra.mxu1 %v417_v2  ;;  %v431_v16 = vld [vmem:[#allocation2 + $0x20] ss:$8 sps:$4 sm:$0xff]   ;;  %v436_v18 = vld [vmem:[#allocation2 + $0x34] ss:$8 sps:$4 sm:$0xff]   ;;  %v439_v20 = vld [vmem:[#allocation2 + $0x30] ss:$8 sps:$4 sm:$0xff]  }
  0x2e   :  { %221 = vmatprep.subr.bf16.mxu0 %v518_v0  ;;  %385 = vmatprep.subr.bf16.mxu1 %v518_v0  ;;  %v382_v22 = vld [vmem:[%s591_s2] ss:$0 sm:$0xff]  ;;  %s519_s2 = smov [#allocation7]  }
  0x2f   :  { %s345_s13 = sshll.u32 %s519_s2, 4  ;;  %s346_s13 = int_to_ptr.vmem [resolvable:$true] %s345_s13 }
  0x30   :  { %s484_s14 = scalar_lea.vmem %s346_s13, 1024  ;;  %p489_p3 = scmp.lt.s32.totalorder %s346_s13, %s346_s13 }
  0x31   :  { %222 = vmatpush1.bf16.msra.mxu0 %v418_v3  ;;  %397 = vmatpush1.bf16.msra.mxu1 %v418_v3  ;;  %p485_p2 = scmp.ne.s32.totalorder %s346_s13, %s484_s14  ;;  %p490_p4 = scmp.lt.s32.totalorder %s484_s14, %s484_s14 }
  0x32   :  { %223 = vmatprep.subr.bf16.mxu0 %v518_v0  ;;  %386 = vmatprep.subr.bf16.mxu1 %v518_v0 }
  0x33   :  { %p491_p5 = por %p490_p4, %p489_p3 }
  0x35   :  { %224 = vmatpush1.bf16.msra.mxu0 %v419_v4  ;;  %398 = vmatpush1.bf16.msra.mxu1 %v419_v4  ;;  %p492_p6 = pnand %p491_p5, %p485_p2 }
  0x36   :  { %225 = vmatprep.subr.bf16.mxu0 %v518_v0  ;;  %387 = vmatprep.subr.bf16.mxu1 %v518_v0 }
  0x39   :  { %226 = vmatpush1.bf16.msra.mxu0 %v420_v6  ;;  %399 = vmatpush1.bf16.msra.mxu1 %v420_v6 }
  0x3a   :  { %227 = vmatprep.subr.bf16.mxu0 %v518_v0  ;;  %388 = vmatprep.subr.bf16.mxu1 %v518_v0 }
  0x3d   :  { %228 = vmatpush1.bf16.msra.mxu0 %v421_v8  ;;  %400 = vmatpush1.bf16.msra.mxu1 %v421_v8 }
  0x3e   :  { %229 = vmatprep.subr.bf16.mxu0 %v518_v0  ;;  %389 = vmatprep.subr.bf16.mxu1 %v518_v0 }
  0x41   :  { %230 = vmatpush1.bf16.msra.mxu0 %v422_v9  ;;  %401 = vmatpush1.bf16.msra.mxu1 %v422_v9 }
  0x42   :  { %231 = vmatprep.subr.bf16.mxu0 %v518_v0  ;;  %390 = vmatprep.subr.bf16.mxu1 %v518_v0 }
  0x45   :  { %232 = vmatpush1.bf16.msra.mxu0 %v423_v10  ;;  %402 = vmatpush1.bf16.msra.mxu1 %v423_v10 }
  0x46   :  { %233 = vmatprep.subr.bf16.mxu0 %v518_v0  ;;  %391 = vmatprep.subr.bf16.mxu1 %v518_v0 }
  0x49   :  { %234 = vmatpush1.bf16.msra.mxu0 %v424_v11  ;;  %403 = vmatpush1.bf16.msra.mxu1 %v424_v11 }
  0x4a   :  { %235 = vmatprep.subr.bf16.mxu0 %v518_v0  ;;  %392 = vmatprep.subr.bf16.mxu1 %v518_v0 }
  0x4d   :  { %236 = vmatpush1.bf16.msra.mxu0 %v425_v12  ;;  %404 = vmatpush1.bf16.msra.mxu1 %v425_v12 }
  0x4e   :  { %237 = vmatprep.subr.bf16.mxu0 %v518_v0  ;;  %393 = vmatprep.subr.bf16.mxu1 %v518_v0 }
  0x51   :  { %238 = vmatpush1.bf16.msra.mxu0 %v426_v13  ;;  %405 = vmatpush1.bf16.msra.mxu1 %v426_v13 }
  0x52   :  { %239 = vmatprep.subr.bf16.mxu0 %v518_v0  ;;  %394 = vmatprep.subr.bf16.mxu1 %v518_v0 }
  0x55   :  { %240 = vmatpush1.bf16.msra.mxu0 %v427_v14  ;;  %406 = vmatpush1.bf16.msra.mxu1 %v427_v14 }
  0x58   :  { %250 = vmatmul.mubr.bf16.vlgmr.msra.gmra.mrb[0].mxu0 %v428_v15  ;;  %266 = vmatmul.mubr.bf16.vlgmr.msra.gmra.mrb[0].mxu1 %v431_v16 }
  0x59   :  { %379 = vmatprep.mubr.msk.bf16.mxu0 %vm204_vm0, %v434_v17  ;;  %381 = vmatprep.mubr.msk.bf16.mxu1 %vm204_vm0, %v436_v18 }
  0x60   :  { %258 = vmatmul.mubr.bf16.gmra.mrb[4].mxu0 %v438_v19  ;;  %274 = vmatmul.mubr.bf16.gmra.mrb[4].mxu1 %v439_v20 }
 0x12b   :  { %v251_v21 = vpop.f32.mrb[0].mxu0  ;;  %v267_v23 = vpop.f32.mrb[0].mxu1 }
 0x12c   :  { %v253_v24 = vpop.f32.mrb[1].mxu0  ;;  %v269_v25 = vpop.f32.mrb[1].mxu1  ;;  %v316_v28 = vadd.f32 %v382_v22, %v251_v21  ;;  %v320_v29 = vadd.f32 %v382_v22, %v267_v23 }
 0x12d   :  { %v254_v26 = vpop.f32.mrb[2].mxu0  ;;  %v270_v27 = vpop.f32.mrb[2].mxu1 }
 0x12e   :  { %v256_v30 = vpop.f32.mrb[3].mxu0  ;;  %v272_v31 = vpop.f32.mrb[3].mxu1  ;;  %v324_v32 = vmax.f32 %v316_v28, 0.0  ;;  %v328_v33 = vmax.f32 %v320_v29, 0.0  ;;  %v317_v34 = vadd.f32 %v382_v22, %v254_v26  ;;  %v321_v35 = vadd.f32 %v382_v22, %v270_v27 }
 0x130   :  { %332 = vst [vmem:[#allocation7] sm:$0xff] %v324_v32  ;;  %336 = vst [vmem:[#allocation7 + $0x20] sm:$0xff] %v328_v33  ;;  %v325_v36 = vmax.f32 %v317_v34, 0.0  ;;  %v329_v37 = vmax.f32 %v321_v35, 0.0 }
 0x132   :  { %333 = vst [vmem:[#allocation7 + $0x8] sm:$0xff] %v325_v36  ;;  %337 = vst [vmem:[#allocation7 + $0x28] sm:$0xff] %v329_v37 }
 0x133   :  { %v259_v38 = vpop.f32.mrb[4].mxu0  ;;  %v275_v39 = vpop.f32.mrb[4].mxu1 }
 0x134   :  { %v261_v40 = vpop.f32.mrb[5].mxu0  ;;  %v277_v41 = vpop.f32.mrb[5].mxu1  ;;  %v318_v44 = vadd.f32 %v382_v22, %v259_v38  ;;  %v322_v45 = vadd.f32 %v382_v22, %v275_v39 }
 0x135   :  { %v262_v42 = vpop.f32.mrb[6].mxu0  ;;  %v278_v43 = vpop.f32.mrb[6].mxu1 }
 0x136   :  { %v264_v46 = vpop.f32.mrb[7].mxu0  ;;  %v280_v47 = vpop.f32.mrb[7].mxu1  ;;  %v326_v48 = vmax.f32 %v318_v44, 0.0  ;;  %v330_v49 = vmax.f32 %v322_v45, 0.0  ;;  %v319_v50 = vadd.f32 %v382_v22, %v262_v42  ;;  %v323_v51 = vadd.f32 %v382_v22, %v278_v43 }
 0x138   :  { %334 = vst [vmem:[#allocation7 + $0x10] sm:$0xff] %v326_v48  ;;  %338 = vst [vmem:[#allocation7 + $0x30] sm:$0xff] %v330_v49  ;;  %v327_v52 = vmax.f32 %v319_v50, 0.0  ;;  %v331_v53 = vmax.f32 %v323_v51, 0.0 }
 0x13a   :  { %335 = vst [vmem:[#allocation7 + $0x18] sm:$0xff] %v327_v52  ;;  %339 = vst [vmem:[#allocation7 + $0x38] sm:$0xff] %v331_v53 }
 0x13b   :  { %495 = shalt.err (!%p492_p6)
}
 0x13c   :  { %s496_s17 = scalar_lea.hbm %s592_s3, 1024 }
 0x13d   :  { %p497_p7 = scmp.ne.s32.totalorder %s592_s3, %s496_s17  ;;  %p500_p8 = scmp.lt.u32.totalorder %s496_s17, %s592_s3 }
 0x13f   :  { %p502_p9 = pnand %p500_p8, %p497_p7 }
 0x141   :  { %505 = shalt.err (!%p502_p9)
}
 0x142   :  { %351 = dma.vmem_to_hbm [thread:$0]  %s346_s13, 1024, %s592_s3, [#allocation4], %s513_s22, %s513_s22, %s514_s23  }
 0x143   :  { %510 = dma.done.wait [#allocation4], 1024  }
 0x144   :  { %511 = vsyncadd [#allocation4], 4294966272 }
 0x145   :  { %355 = vsyncpa [#allocation3], 1 }
 0x146   :  { %356 = vsyncpa [#allocation6], 1 }
 0x147   :  { %357 = vsyncpa [#allocation4], 1 }

</bundles_post_ra>
